<compile_context>
chip_gen: v6e
topology: v6e:2x2x1
jax: 0.10.0
libtpu: 0.0.40
codegen_flags: <defaults>
</compile_context>

<pallas_src>
import math

import jax
import jax.numpy as jnp
from jax import lax
from jax.experimental import pallas as pl
from jax.experimental.pallas import tpu as pltpu

# ---------------- model configuration (small, consistent with the module) ----
B = 8
INPUT_SIZE = 64
OUTPUT_SIZE = 64
HIDDEN_SIZES = [64]                 # module appends output_size -> [64, 64]
TIME_EMB = 32
TIME_DIM = 4 * TIME_EMB             # 128
COND_EMBED = 16
GROUPS = 32
EPS = 1e-5

ALL_HIDDEN = HIDDEN_SIZES + [OUTPUT_SIZE]
NUM_LAYERS = len(ALL_HIDDEN)        # 2 TimestepEmbedSequential blocks
IN_DIMS = [INPUT_SIZE] + ALL_HIDDEN[:-1]
C = ALL_HIDDEN[-1]                  # 64
GSIZE = C // GROUPS                 # 2

assert all(c == C for c in ALL_HIDDEN), "slab packing assumes uniform channel width"
assert GSIZE == 2, "pair-swap GroupNorm assumes group size 2"

# ---------------- packed-activation lane layout -------------------------------
ACT_W = 128                          # padded activation lane width (one vreg)
X_OFF, T_OFF, Y_OFF = 0, 64, 96      # x | t_emb | y | zero-pad
assert Y_OFF + COND_EMBED <= ACT_W

# ---------------- single parameter slab layout (rows x 128 lanes, f32) --------
R_WT1P = 0                           # [128,128] K-padded wt1 (rows 64:96)
R_WT2 = R_WT1P + ACT_W               # [128,128] wt2
R_WCP = R_WT2 + TIME_DIM             # [128,128] K-padded wc (rows 96:112)
R_WES = R_WCP + ACT_W                # [128,128] we0 | we1 lane-stacked
R_W0P = R_WES + TIME_DIM             # [128, 64] K-padded layer-0 weight (lanes 0:64)
R_W1 = R_W0P + ACT_W                 # [ 64, 64] layer-1 weight (lanes 0:64)
R_VEC = R_W1 + C                     # 1-row vectors start here
N_GLOBAL_VEC = 4                     # bt1, bt2, bc, bee_stack (all 128-lane rows)
N_LAYER_VEC = 5                      # b, gn1_gamma, gn1_beta, gn2_gamma, gn2_beta
R_OUT_GN = R_VEC + N_GLOBAL_VEC + N_LAYER_VEC * NUM_LAYERS
SLAB_ROWS = R_OUT_GN + 2             # + output GroupNorm gamma, beta   (= 720)


# ---------------- in-kernel helpers -------------------------------------------
def _silu(x):
    # Exact: sigmoid(x) == 0.5*(1 + tanh(x/2)).  One EUP op per SiLU on the
    # serial chain (vs. exp + reciprocal), and no approximation error to be
    # amplified by the group-size-2 GroupNorms.
    return 0.5 * x * (1.0 + jnp.tanh(0.5 * x))


# ---------------- Pallas kernel ------------------------------------------------
def mlp_pnet_kernel(acts_ref, slab_ref, out_ref):
    acts = acts_ref[...]                                   # [B, 128]
    bsz = acts.shape[0]

    # Lane parity mask for the GroupNorm pair swap (built once, VPU only).
    lane = lax.broadcasted_iota(jnp.int32, (bsz, C), 1)
    lane_even = (lane % 2) == 0

    def groupnorm_pair(h, gamma, beta):
        # GroupNorm(32, 64) == per-pair normalization.  Partner channel via an
        # XLU lane rotate + parity select -- no MXU matmul on the h-chain.
        partner = jnp.where(lane_even,
                            jnp.roll(h, -1, axis=1),       # even lane i -> h[i+1]
                            jnp.roll(h, 1, axis=1))        # odd  lane i -> h[i-1]
        d = 0.5 * (h - partner)                            # x - mean (exact)
        xhat = d * lax.rsqrt(d * d + EPS)                  # var == d^2 for pairs
        return xhat * gamma + beta

    # ---- global 1-row vectors (128-lane rows) --------------------------------
    bt1 = slab_ref[R_VEC + 0:R_VEC + 1, :]
    bt2 = slab_ref[R_VEC + 1:R_VEC + 2, :]
    bc = slab_ref[R_VEC + 2:R_VEC + 3, :]
    bee = slab_ref[R_VEC + 3:R_VEC + 4, :]                 # bee0 | bee1

    # ---- time_embed + class-conditional embedding (all K-padded to 128) ------
    t = jnp.dot(acts, slab_ref[R_WT1P:R_WT1P + ACT_W, :],
                preferred_element_type=jnp.float32) + bt1
    emb = jnp.dot(_silu(t), slab_ref[R_WT2:R_WT2 + TIME_DIM, :],
                  preferred_element_type=jnp.float32) + bt2
    emb = emb + jnp.dot(acts, slab_ref[R_WCP:R_WCP + ACT_W, :],
                        preferred_element_type=jnp.float32) + bc

    # ---- hoisted, lane-stacked emb projections for BOTH ResBlocks ------------
    emb_proj = jnp.dot(_silu(emb), slab_ref[R_WES:R_WES + TIME_DIM, :],
                       preferred_element_type=jnp.float32) + bee     # [B, 128]

    # ---- layer stack (unrolled at trace time) ---------------------------------
    h = acts
    w_rows = [(R_W0P, ACT_W), (R_W1, C)]
    for li in range(NUM_LAYERS):
        r0, kdim = w_rows[li]
        w = slab_ref[r0:r0 + kdim, 0:C]
        vb = R_VEC + N_GLOBAL_VEC + N_LAYER_VEC * li
        b = slab_ref[vb + 0:vb + 1, 0:C]
        g1 = slab_ref[vb + 1:vb + 2, 0:C]
        be1 = slab_ref[vb + 2:vb + 3, 0:C]
        g2 = slab_ref[vb + 3:vb + 4, 0:C]
        be2 = slab_ref[vb + 4:vb + 5, 0:C]

        # Linear + ReLU
        h = jnp.maximum(jnp.dot(h, w, preferred_element_type=jnp.float32) + b, 0.0)

        # ResBlock (use_scale_shift_norm=False, dropout=0)
        rb = _silu(groupnorm_pair(h, g1, be1))             # in_layers
        rb = rb + emb_proj[:, C * li:C * (li + 1)]         # + emb_layers(emb)
        rb = _silu(groupnorm_pair(rb, g2, be2))            # out_layers
        h = h + rb                                         # skip connection

    # ---- output head: GroupNorm32 + SiLU --------------------------------------
    go = slab_ref[R_OUT_GN + 0:R_OUT_GN + 1, 0:C]
    bo = slab_ref[R_OUT_GN + 1:R_OUT_GN + 2, 0:C]
    out_ref[...] = _silu(groupnorm_pair(h, go, bo))


def _cost_estimate(batch):
    mm_flops = 2 * batch * (4 * ACT_W * ACT_W + ACT_W * C + C * C)
    gn_flops = 10 * batch * 5 * C
    trans = batch * (2 * ACT_W + 5 * C)                    # one tanh per SiLU elem
    bytes_accessed = 4 * (batch * ACT_W + SLAB_ROWS * ACT_W + batch * OUTPUT_SIZE)
    return pl.CostEstimate(flops=mm_flops + gn_flops, transcendentals=trans,
                           bytes_accessed=bytes_accessed)


def run_pnet(acts, slab):
    batch = acts.shape[0]
    return pl.pallas_call(
        mlp_pnet_kernel,
        out_shape=jax.ShapeDtypeStruct((batch, OUTPUT_SIZE), jnp.float32),
        in_specs=[pl.BlockSpec(memory_space=pltpu.MemorySpace.VMEM)] * 2,
        out_specs=pl.BlockSpec(memory_space=pltpu.MemorySpace.VMEM),
        compiler_params=pltpu.CompilerParams(vmem_limit_bytes=4 * 1024 * 1024),
        cost_estimate=_cost_estimate(batch),
    )(acts, slab)


# ---------------- host-side glue ----------------------------------------------
def timestep_embedding(timesteps, dim, max_period=10000.0):
    half = dim // 2
    freqs = jnp.exp(-math.log(max_period) *
                    jnp.arange(half, dtype=jnp.float32) / half)
    args = timesteps.astype(jnp.float32)[:, None] * freqs[None, :]
    return jnp.concatenate([jnp.cos(args), jnp.sin(args)], axis=-1)


@jax.jit
def forward(x, timesteps, y, slab):
    # Single dispatch: sinusoidal embedding + input packing fuse with the
    # surrounding XLA program; the kernel sees 2 inputs (acts, slab).
    t_emb = timestep_embedding(timesteps, TIME_EMB)
    b = x.shape[0]
    pad = jnp.zeros((b, ACT_W - (INPUT_SIZE + TIME_EMB + COND_EMBED)), jnp.float32)
    acts = jnp.concatenate([x, t_emb, y, pad], axis=1)     # [b, 128]
    return run_pnet(acts, slab)


def init_params(key):
    ks = iter(jax.random.split(key, 128))

    def lin(i, o):
        w = jax.random.normal(next(ks), (i, o), jnp.float32) / math.sqrt(i)
        b = 0.02 * jax.random.normal(next(ks), (1, o), jnp.float32)
        return w, b

    def gn(c):
        g = 1.0 + 0.05 * jax.random.normal(next(ks), (1, c), jnp.float32)
        bt = 0.05 * jax.random.normal(next(ks), (1, c), jnp.float32)
        return g, bt

    params = []
    wt1, bt1 = lin(TIME_EMB, TIME_DIM)
    wt2, bt2 = lin(TIME_DIM, TIME_DIM)
    wc, bc = lin(COND_EMBED, TIME_DIM)
    params += [wt1, bt1, wt2, bt2, wc, bc]

    for li in range(NUM_LAYERS):
        c = ALL_HIDDEN[li]
        w, b = lin(IN_DIMS[li], c)
        g1, be1 = gn(c)
        we, bee = lin(TIME_DIM, c)
        g2, be2 = gn(c)
        params += [w, b, g1, be1, we, bee, g2, be2]

    go, bo = gn(OUTPUT_SIZE)
    params += [go, bo]
    return params


def pack_params(params):
    """Pack every parameter into ONE lane-dense [SLAB_ROWS, 128] f32 slab.

    wt1 / wc / layer-0 weight are zero-padded along K so the kernel matmuls the
    full padded [B,128] activation tensor with no in-kernel lane slicing of
    activations.  we0|we1 and bee0|bee1 are lane-stacked for the hoisted emb
    projection.  (Kept f32: bf16 weights would be amplified past the 1e-2
    tolerance by the group-size-2 GroupNorms.)
    """
    wt1, bt1, wt2, bt2, wc, bc = params[:6]
    layer_p = params[6:6 + 8 * NUM_LAYERS]
    go, bo = params[-2:]

    def kpad(w, row_off):
        out = jnp.zeros((ACT_W, w.shape[1]), jnp.float32)
        return out.at[row_off:row_off + w.shape[0], :].set(w)

    def lanepad(a):
        return jnp.pad(a, ((0, 0), (0, ACT_W - a.shape[1])))

    ws, wes, bees, layer_vecs = [], [], [], []
    for li in range(NUM_LAYERS):
        w, b, g1, be1, we, bee, g2, be2 = layer_p[8 * li:8 * (li + 1)]
        ws.append(w)
        wes.append(we)
        bees.append(bee)
        layer_vecs += [b, g1, be1, g2, be2]

    rows = [
        kpad(wt1, T_OFF),                      # R_WT1P
        wt2,                                   # R_WT2
        kpad(wc, Y_OFF),                       # R_WCP
        jnp.concatenate(wes, axis=1),          # R_WES  (we0|we1)
        lanepad(kpad(ws[0], X_OFF)),           # R_W0P
        lanepad(ws[1]),                        # R_W1
        bt1, bt2, bc,                          # R_VEC + 0..2
        jnp.concatenate(bees, axis=1),         # R_VEC + 3 (bee0|bee1)
    ] + [lanepad(v) for v in layer_vecs] + [lanepad(go), lanepad(bo)]

    slab = jnp.concatenate(rows, axis=0)
    assert slab.shape == (SLAB_ROWS, ACT_W), slab.shape
    return slab


# ---------------- pure-JAX reference (for correctness check) ------------------
def _silu_ref(x):
    return x * (1.0 / (1.0 + jnp.exp(-x)))


def _groupnorm_ref(h, gamma, beta, groups=GROUPS):
    b, c = h.shape
    hg = h.reshape(b, groups, c // groups)
    mean = hg.mean(axis=-1, keepdims=True)
    var = hg.var(axis=-1, keepdims=True)
    xhat = ((hg - mean) / jnp.sqrt(var + EPS)).reshape(b, c)
    return xhat * gamma + beta


def forward_ref(x, t_emb, y, params):
    wt1, bt1, wt2, bt2, wc, bc = params[0:6]
    emb = _silu_ref(t_emb @ wt1 + bt1) @ wt2 + bt2
    emb = emb + y @ wc + bc
    se = _silu_ref(emb)
    h = x
    for li in range(NUM_LAYERS):
        w, b, g1, be1, we, bee, g2, be2 = params[6 + 8 * li: 6 + 8 * (li + 1)]
        h = jnp.maximum(h @ w + b, 0.0)
        rb = _silu_ref(_groupnorm_ref(h, g1, be1))
        rb = rb + se @ we + bee
        rb = _silu_ref(_groupnorm_ref(rb, g2, be2))
        h = h + rb
    go, bo = params[6 + 8 * NUM_LAYERS:]
    return _silu_ref(_groupnorm_ref(h, go, bo))


# ---------------- main ----------------------------------------------------------
if __name__ == "__main__":
    key = jax.random.PRNGKey(0)
    kx, ky, kt, kp = jax.random.split(key, 4)

    x = jax.random.normal(kx, (B, INPUT_SIZE), jnp.float32)
    y = jax.random.normal(ky, (B, COND_EMBED), jnp.float32)
    timesteps = jax.random.randint(kt, (B,), 0, 1000)

    params = init_params(kp)
    slab = pack_params(params)

    out = forward(x, timesteps, y, slab)
    out = jax.block_until_ready(out)

    t_emb = timestep_embedding(timesteps, TIME_EMB)
    ref = forward_ref(x, t_emb, y, params)
    max_err = float(jnp.max(jnp.abs(out - ref)))
    assert out.shape == (B, OUTPUT_SIZE)
    assert max_err < 1e-2, f"mismatch vs reference: {max_err}"

    print("KERNEL_OK")
</pallas_src>

<mosaic_0001>
module attributes {stable_mosaic.version = 11 : i64} {
  func.func @mlp_pnet_kernel(%arg0: memref<8x128xf32, #tpu.memory_space<vmem>>, %arg1: memref<720x128xf32, #tpu.memory_space<vmem>>, %arg2: memref<8x64xf32, #tpu.memory_space<vmem>>) attributes {dimension_semantics = [], scalar_prefetch = 0 : i64, scratch_operands = 0 : i64, tpu.core_type = #tpu.core_type<tc>} {
    %c0 = arith.constant 0 : index
    %c0_0 = arith.constant 0 : index
    %0 = vector.load %arg0[%c0, %c0_0] : memref<8x128xf32, #tpu.memory_space<vmem>>, vector<8x128xf32>
    %1 = tpu.iota {dimensions = array<i32: 1>} : vector<8x64xi32>
    %c2_i32 = arith.constant 2 : i32
    %c0_i32 = arith.constant 0 : i32
    %2 = arith.cmpi eq, %c2_i32, %c0_i32 : i32
    %c1_i32 = arith.constant 1 : i32
    %3 = arith.select %2, %c1_i32, %c2_i32 : i32
    %4 = vector.broadcast %3 : i32 to vector<8x64xi32>
    %5 = arith.remsi %1, %4 : vector<8x64xi32>
    %c0_i32_1 = arith.constant 0 : i32
    %6 = vector.broadcast %c0_i32_1 : i32 to vector<8x64xi32>
    %7 = arith.cmpi ne, %5, %6 : vector<8x64xi32>
    %c0_i32_2 = arith.constant 0 : i32
    %8 = vector.broadcast %c0_i32_2 : i32 to vector<8x64xi32>
    %9 = arith.cmpi slt, %5, %8 : vector<8x64xi32>
    %c0_i32_3 = arith.constant 0 : i32
    %10 = arith.cmpi slt, %3, %c0_i32_3 : i32
    %11 = vector.broadcast %10 : i1 to vector<8x64xi1>
    %12 = vector.broadcast %11 : vector<8x64xi1> to vector<8x64xi1>
    %13 = arith.xori %9, %12 : vector<8x64xi1>
    %14 = arith.andi %13, %7 : vector<8x64xi1>
    %15 = vector.broadcast %3 : i32 to vector<8x64xi32>
    %16 = arith.addi %5, %15 : vector<8x64xi32>
    %17 = arith.select %14, %16, %5 : vector<8x64xi1>, vector<8x64xi32>
    %c0_i32_4 = arith.constant 0 : i32
    %18 = vector.broadcast %c0_i32_4 : i32 to vector<8x64xi32>
    %19 = arith.cmpi eq, %17, %18 : vector<8x64xi32>
    %c704 = arith.constant 704 : index
    %c0_5 = arith.constant 0 : index
    %20 = vector.load %arg1[%c704, %c0_5] : memref<720x128xf32, #tpu.memory_space<vmem>>, vector<1x128xf32>
    %c705 = arith.constant 705 : index
    %c0_6 = arith.constant 0 : index
    %21 = vector.load %arg1[%c705, %c0_6] : memref<720x128xf32, #tpu.memory_space<vmem>>, vector<1x128xf32>
    %c706 = arith.constant 706 : index
    %c0_7 = arith.constant 0 : index
    %22 = vector.load %arg1[%c706, %c0_7] : memref<720x128xf32, #tpu.memory_space<vmem>>, vector<1x128xf32>
    %c707 = arith.constant 707 : index
    %c0_8 = arith.constant 0 : index
    %23 = vector.load %arg1[%c707, %c0_8] : memref<720x128xf32, #tpu.memory_space<vmem>>, vector<1x128xf32>
    %c0_9 = arith.constant 0 : index
    %c0_10 = arith.constant 0 : index
    %24 = vector.load %arg1[%c0_9, %c0_10] : memref<720x128xf32, #tpu.memory_space<vmem>>, vector<128x128xf32>
    %cst = arith.constant dense<0.000000e+00> : vector<8x128xf32>
    %25 = tpu.matmul %0, %24, %cst {dimension_numbers = #tpu.dot_dimension_numbers<[1], [0], [0], [1], [0, 0, 1, 1], [], []>} : vector<8x128xf32>, vector<128x128xf32>, vector<8x128xf32> -> vector<8x128xf32>
    %26 = vector.broadcast %20 : vector<1x128xf32> to vector<8x128xf32>
    %27 = arith.addf %25, %26 : vector<8x128xf32>
    %cst_11 = arith.constant 5.000000e-01 : f32
    %28 = vector.broadcast %cst_11 : f32 to vector<8x128xf32>
    %29 = arith.mulf %28, %27 : vector<8x128xf32>
    %cst_12 = arith.constant 5.000000e-01 : f32
    %30 = vector.broadcast %cst_12 : f32 to vector<8x128xf32>
    %31 = arith.mulf %30, %27 : vector<8x128xf32>
    %32 = math.tanh %31 : vector<8x128xf32>
    %cst_13 = arith.constant 1.000000e+00 : f32
    %33 = vector.broadcast %cst_13 : f32 to vector<8x128xf32>
    %34 = arith.addf %33, %32 : vector<8x128xf32>
    %35 = arith.mulf %29, %34 : vector<8x128xf32>
    %c128 = arith.constant 128 : index
    %c0_14 = arith.constant 0 : index
    %36 = vector.load %arg1[%c128, %c0_14] : memref<720x128xf32, #tpu.memory_space<vmem>>, vector<128x128xf32>
    %cst_15 = arith.constant dense<0.000000e+00> : vector<8x128xf32>
    %37 = tpu.matmul %35, %36, %cst_15 {dimension_numbers = #tpu.dot_dimension_numbers<[1], [0], [0], [1], [0, 0, 1, 1], [], []>} : vector<8x128xf32>, vector<128x128xf32>, vector<8x128xf32> -> vector<8x128xf32>
    %38 = vector.broadcast %21 : vector<1x128xf32> to vector<8x128xf32>
    %39 = arith.addf %37, %38 : vector<8x128xf32>
    %c256 = arith.constant 256 : index
    %c0_16 = arith.constant 0 : index
    %40 = vector.load %arg1[%c256, %c0_16] : memref<720x128xf32, #tpu.memory_space<vmem>>, vector<128x128xf32>
    %cst_17 = arith.constant dense<0.000000e+00> : vector<8x128xf32>
    %41 = tpu.matmul %0, %40, %cst_17 {dimension_numbers = #tpu.dot_dimension_numbers<[1], [0], [0], [1], [0, 0, 1, 1], [], []>} : vector<8x128xf32>, vector<128x128xf32>, vector<8x128xf32> -> vector<8x128xf32>
    %42 = arith.addf %39, %41 : vector<8x128xf32>
    %43 = vector.broadcast %22 : vector<1x128xf32> to vector<8x128xf32>
    %44 = arith.addf %42, %43 : vector<8x128xf32>
    %cst_18 = arith.constant 5.000000e-01 : f32
    %45 = vector.broadcast %cst_18 : f32 to vector<8x128xf32>
    %46 = arith.mulf %45, %44 : vector<8x128xf32>
    %cst_19 = arith.constant 5.000000e-01 : f32
    %47 = vector.broadcast %cst_19 : f32 to vector<8x128xf32>
    %48 = arith.mulf %47, %44 : vector<8x128xf32>
    %49 = math.tanh %48 : vector<8x128xf32>
    %cst_20 = arith.constant 1.000000e+00 : f32
    %50 = vector.broadcast %cst_20 : f32 to vector<8x128xf32>
    %51 = arith.addf %50, %49 : vector<8x128xf32>
    %52 = arith.mulf %46, %51 : vector<8x128xf32>
    %c384 = arith.constant 384 : index
    %c0_21 = arith.constant 0 : index
    %53 = vector.load %arg1[%c384, %c0_21] : memref<720x128xf32, #tpu.memory_space<vmem>>, vector<128x128xf32>
    %cst_22 = arith.constant dense<0.000000e+00> : vector<8x128xf32>
    %54 = tpu.matmul %52, %53, %cst_22 {dimension_numbers = #tpu.dot_dimension_numbers<[1], [0], [0], [1], [0, 0, 1, 1], [], []>} : vector<8x128xf32>, vector<128x128xf32>, vector<8x128xf32> -> vector<8x128xf32>
    %55 = vector.broadcast %23 : vector<1x128xf32> to vector<8x128xf32>
    %56 = arith.addf %54, %55 : vector<8x128xf32>
    %c512 = arith.constant 512 : index
    %c0_23 = arith.constant 0 : index
    %57 = vector.load %arg1[%c512, %c0_23] : memref<720x128xf32, #tpu.memory_space<vmem>>, vector<128x64xf32>
    %c708 = arith.constant 708 : index
    %c0_24 = arith.constant 0 : index
    %58 = vector.load %arg1[%c708, %c0_24] : memref<720x128xf32, #tpu.memory_space<vmem>>, vector<1x64xf32>
    %c709 = arith.constant 709 : index
    %c0_25 = arith.constant 0 : index
    %59 = vector.load %arg1[%c709, %c0_25] : memref<720x128xf32, #tpu.memory_space<vmem>>, vector<1x64xf32>
    %c710 = arith.constant 710 : index
    %c0_26 = arith.constant 0 : index
    %60 = vector.load %arg1[%c710, %c0_26] : memref<720x128xf32, #tpu.memory_space<vmem>>, vector<1x64xf32>
    %c711 = arith.constant 711 : index
    %c0_27 = arith.constant 0 : index
    %61 = vector.load %arg1[%c711, %c0_27] : memref<720x128xf32, #tpu.memory_space<vmem>>, vector<1x64xf32>
    %c712 = arith.constant 712 : index
    %c0_28 = arith.constant 0 : index
    %62 = vector.load %arg1[%c712, %c0_28] : memref<720x128xf32, #tpu.memory_space<vmem>>, vector<1x64xf32>
    %cst_29 = arith.constant dense<0.000000e+00> : vector<8x64xf32>
    %63 = tpu.matmul %0, %57, %cst_29 {dimension_numbers = #tpu.dot_dimension_numbers<[1], [0], [0], [1], [0, 0, 1, 1], [], []>} : vector<8x128xf32>, vector<128x64xf32>, vector<8x64xf32> -> vector<8x64xf32>
    %64 = vector.broadcast %58 : vector<1x64xf32> to vector<8x64xf32>
    %65 = arith.addf %63, %64 : vector<8x64xf32>
    %cst_30 = arith.constant 0.000000e+00 : f32
    %66 = vector.broadcast %cst_30 : f32 to vector<8x64xf32>
    %67 = arith.maximumf %65, %66 : vector<8x64xf32>
    %68 = vector.extract_strided_slice %67 {offsets = [0, 1], sizes = [8, 63], strides = [1, 1]} : vector<8x64xf32> to vector<8x63xf32>
    %69 = vector.extract_strided_slice %67 {offsets = [0, 0], sizes = [8, 1], strides = [1, 1]} : vector<8x64xf32> to vector<8x1xf32>
    %70 = tpu.concatenate %68, %69 in 1 : vector<8x63xf32>, vector<8x1xf32> -> vector<8x64xf32>
    %71 = vector.extract_strided_slice %67 {offsets = [0, 63], sizes = [8, 1], strides = [1, 1]} : vector<8x64xf32> to vector<8x1xf32>
    %72 = vector.extract_strided_slice %67 {offsets = [0, 0], sizes = [8, 63], strides = [1, 1]} : vector<8x64xf32> to vector<8x63xf32>
    %73 = tpu.concatenate %71, %72 in 1 : vector<8x1xf32>, vector<8x63xf32> -> vector<8x64xf32>
    %74 = arith.select %19, %70, %73 : vector<8x64xi1>, vector<8x64xf32>
    %75 = arith.subf %67, %74 : vector<8x64xf32>
    %cst_31 = arith.constant 5.000000e-01 : f32
    %76 = vector.broadcast %cst_31 : f32 to vector<8x64xf32>
    %77 = arith.mulf %76, %75 : vector<8x64xf32>
    %78 = arith.mulf %77, %77 : vector<8x64xf32>
    %cst_32 = arith.constant 9.99999974E-6 : f32
    %79 = vector.broadcast %cst_32 : f32 to vector<8x64xf32>
    %80 = arith.addf %78, %79 : vector<8x64xf32>
    %81 = math.rsqrt %80 : vector<8x64xf32>
    %82 = arith.mulf %77, %81 : vector<8x64xf32>
    %83 = vector.broadcast %59 : vector<1x64xf32> to vector<8x64xf32>
    %84 = arith.mulf %82, %83 : vector<8x64xf32>
    %85 = vector.broadcast %60 : vector<1x64xf32> to vector<8x64xf32>
    %86 = arith.addf %84, %85 : vector<8x64xf32>
    %cst_33 = arith.constant 5.000000e-01 : f32
    %87 = vector.broadcast %cst_33 : f32 to vector<8x64xf32>
    %88 = arith.mulf %87, %86 : vector<8x64xf32>
    %cst_34 = arith.constant 5.000000e-01 : f32
    %89 = vector.broadcast %cst_34 : f32 to vector<8x64xf32>
    %90 = arith.mulf %89, %86 : vector<8x64xf32>
    %91 = math.tanh %90 : vector<8x64xf32>
    %cst_35 = arith.constant 1.000000e+00 : f32
    %92 = vector.broadcast %cst_35 : f32 to vector<8x64xf32>
    %93 = arith.addf %92, %91 : vector<8x64xf32>
    %94 = arith.mulf %88, %93 : vector<8x64xf32>
    %95 = vector.extract_strided_slice %56 {offsets = [0, 0], sizes = [8, 64], strides = [1, 1]} : vector<8x128xf32> to vector<8x64xf32>
    %96 = arith.addf %94, %95 : vector<8x64xf32>
    %97 = vector.extract_strided_slice %96 {offsets = [0, 1], sizes = [8, 63], strides = [1, 1]} : vector<8x64xf32> to vector<8x63xf32>
    %98 = vector.extract_strided_slice %96 {offsets = [0, 0], sizes = [8, 1], strides = [1, 1]} : vector<8x64xf32> to vector<8x1xf32>
    %99 = tpu.concatenate %97, %98 in 1 : vector<8x63xf32>, vector<8x1xf32> -> vector<8x64xf32>
    %100 = vector.extract_strided_slice %96 {offsets = [0, 63], sizes = [8, 1], strides = [1, 1]} : vector<8x64xf32> to vector<8x1xf32>
    %101 = vector.extract_strided_slice %96 {offsets = [0, 0], sizes = [8, 63], strides = [1, 1]} : vector<8x64xf32> to vector<8x63xf32>
    %102 = tpu.concatenate %100, %101 in 1 : vector<8x1xf32>, vector<8x63xf32> -> vector<8x64xf32>
    %103 = arith.select %19, %99, %102 : vector<8x64xi1>, vector<8x64xf32>
    %104 = arith.subf %96, %103 : vector<8x64xf32>
    %cst_36 = arith.constant 5.000000e-01 : f32
    %105 = vector.broadcast %cst_36 : f32 to vector<8x64xf32>
    %106 = arith.mulf %105, %104 : vector<8x64xf32>
    %107 = arith.mulf %106, %106 : vector<8x64xf32>
    %cst_37 = arith.constant 9.99999974E-6 : f32
    %108 = vector.broadcast %cst_37 : f32 to vector<8x64xf32>
    %109 = arith.addf %107, %108 : vector<8x64xf32>
    %110 = math.rsqrt %109 : vector<8x64xf32>
    %111 = arith.mulf %106, %110 : vector<8x64xf32>
    %112 = vector.broadcast %61 : vector<1x64xf32> to vector<8x64xf32>
    %113 = arith.mulf %111, %112 : vector<8x64xf32>
    %114 = vector.broadcast %62 : vector<1x64xf32> to vector<8x64xf32>
    %115 = arith.addf %113, %114 : vector<8x64xf32>
    %cst_38 = arith.constant 5.000000e-01 : f32
    %116 = vector.broadcast %cst_38 : f32 to vector<8x64xf32>
    %117 = arith.mulf %116, %115 : vector<8x64xf32>
    %cst_39 = arith.constant 5.000000e-01 : f32
    %118 = vector.broadcast %cst_39 : f32 to vector<8x64xf32>
    %119 = arith.mulf %118, %115 : vector<8x64xf32>
    %120 = math.tanh %119 : vector<8x64xf32>
    %cst_40 = arith.constant 1.000000e+00 : f32
    %121 = vector.broadcast %cst_40 : f32 to vector<8x64xf32>
    %122 = arith.addf %121, %120 : vector<8x64xf32>
    %123 = arith.mulf %117, %122 : vector<8x64xf32>
    %124 = arith.addf %67, %123 : vector<8x64xf32>
    %c640 = arith.constant 640 : index
    %c0_41 = arith.constant 0 : index
    %125 = vector.load %arg1[%c640, %c0_41] : memref<720x128xf32, #tpu.memory_space<vmem>>, vector<64x64xf32>
    %c713 = arith.constant 713 : index
    %c0_42 = arith.constant 0 : index
    %126 = vector.load %arg1[%c713, %c0_42] : memref<720x128xf32, #tpu.memory_space<vmem>>, vector<1x64xf32>
    %c714 = arith.constant 714 : index
    %c0_43 = arith.constant 0 : index
    %127 = vector.load %arg1[%c714, %c0_43] : memref<720x128xf32, #tpu.memory_space<vmem>>, vector<1x64xf32>
    %c715 = arith.constant 715 : index
    %c0_44 = arith.constant 0 : index
    %128 = vector.load %arg1[%c715, %c0_44] : memref<720x128xf32, #tpu.memory_space<vmem>>, vector<1x64xf32>
    %c716 = arith.constant 716 : index
    %c0_45 = arith.constant 0 : index
    %129 = vector.load %arg1[%c716, %c0_45] : memref<720x128xf32, #tpu.memory_space<vmem>>, vector<1x64xf32>
    %c717 = arith.constant 717 : index
    %c0_46 = arith.constant 0 : index
    %130 = vector.load %arg1[%c717, %c0_46] : memref<720x128xf32, #tpu.memory_space<vmem>>, vector<1x64xf32>
    %cst_47 = arith.constant dense<0.000000e+00> : vector<8x64xf32>
    %131 = tpu.matmul %124, %125, %cst_47 {dimension_numbers = #tpu.dot_dimension_numbers<[1], [0], [0], [1], [0, 0, 1, 1], [], []>} : vector<8x64xf32>, vector<64x64xf32>, vector<8x64xf32> -> vector<8x64xf32>
    %132 = vector.broadcast %126 : vector<1x64xf32> to vector<8x64xf32>
    %133 = arith.addf %131, %132 : vector<8x64xf32>
    %cst_48 = arith.constant 0.000000e+00 : f32
    %134 = vector.broadcast %cst_48 : f32 to vector<8x64xf32>
    %135 = arith.maximumf %133, %134 : vector<8x64xf32>
    %136 = vector.extract_strided_slice %135 {offsets = [0, 1], sizes = [8, 63], strides = [1, 1]} : vector<8x64xf32> to vector<8x63xf32>
    %137 = vector.extract_strided_slice %135 {offsets = [0, 0], sizes = [8, 1], strides = [1, 1]} : vector<8x64xf32> to vector<8x1xf32>
    %138 = tpu.concatenate %136, %137 in 1 : vector<8x63xf32>, vector<8x1xf32> -> vector<8x64xf32>
    %139 = vector.extract_strided_slice %135 {offsets = [0, 63], sizes = [8, 1], strides = [1, 1]} : vector<8x64xf32> to vector<8x1xf32>
    %140 = vector.extract_strided_slice %135 {offsets = [0, 0], sizes = [8, 63], strides = [1, 1]} : vector<8x64xf32> to vector<8x63xf32>
    %141 = tpu.concatenate %139, %140 in 1 : vector<8x1xf32>, vector<8x63xf32> -> vector<8x64xf32>
    %142 = arith.select %19, %138, %141 : vector<8x64xi1>, vector<8x64xf32>
    %143 = arith.subf %135, %142 : vector<8x64xf32>
    %cst_49 = arith.constant 5.000000e-01 : f32
    %144 = vector.broadcast %cst_49 : f32 to vector<8x64xf32>
    %145 = arith.mulf %144, %143 : vector<8x64xf32>
    %146 = arith.mulf %145, %145 : vector<8x64xf32>
    %cst_50 = arith.constant 9.99999974E-6 : f32
    %147 = vector.broadcast %cst_50 : f32 to vector<8x64xf32>
    %148 = arith.addf %146, %147 : vector<8x64xf32>
    %149 = math.rsqrt %148 : vector<8x64xf32>
    %150 = arith.mulf %145, %149 : vector<8x64xf32>
    %151 = vector.broadcast %127 : vector<1x64xf32> to vector<8x64xf32>
    %152 = arith.mulf %150, %151 : vector<8x64xf32>
    %153 = vector.broadcast %128 : vector<1x64xf32> to vector<8x64xf32>
    %154 = arith.addf %152, %153 : vector<8x64xf32>
    %cst_51 = arith.constant 5.000000e-01 : f32
    %155 = vector.broadcast %cst_51 : f32 to vector<8x64xf32>
    %156 = arith.mulf %155, %154 : vector<8x64xf32>
    %cst_52 = arith.constant 5.000000e-01 : f32
    %157 = vector.broadcast %cst_52 : f32 to vector<8x64xf32>
    %158 = arith.mulf %157, %154 : vector<8x64xf32>
    %159 = math.tanh %158 : vector<8x64xf32>
    %cst_53 = arith.constant 1.000000e+00 : f32
    %160 = vector.broadcast %cst_53 : f32 to vector<8x64xf32>
    %161 = arith.addf %160, %159 : vector<8x64xf32>
    %162 = arith.mulf %156, %161 : vector<8x64xf32>
    %163 = vector.extract_strided_slice %56 {offsets = [0, 64], sizes = [8, 64], strides = [1, 1]} : vector<8x128xf32> to vector<8x64xf32>
    %164 = arith.addf %162, %163 : vector<8x64xf32>
    %165 = vector.extract_strided_slice %164 {offsets = [0, 1], sizes = [8, 63], strides = [1, 1]} : vector<8x64xf32> to vector<8x63xf32>
    %166 = vector.extract_strided_slice %164 {offsets = [0, 0], sizes = [8, 1], strides = [1, 1]} : vector<8x64xf32> to vector<8x1xf32>
    %167 = tpu.concatenate %165, %166 in 1 : vector<8x63xf32>, vector<8x1xf32> -> vector<8x64xf32>
    %168 = vector.extract_strided_slice %164 {offsets = [0, 63], sizes = [8, 1], strides = [1, 1]} : vector<8x64xf32> to vector<8x1xf32>
    %169 = vector.extract_strided_slice %164 {offsets = [0, 0], sizes = [8, 63], strides = [1, 1]} : vector<8x64xf32> to vector<8x63xf32>
    %170 = tpu.concatenate %168, %169 in 1 : vector<8x1xf32>, vector<8x63xf32> -> vector<8x64xf32>
    %171 = arith.select %19, %167, %170 : vector<8x64xi1>, vector<8x64xf32>
    %172 = arith.subf %164, %171 : vector<8x64xf32>
    %cst_54 = arith.constant 5.000000e-01 : f32
    %173 = vector.broadcast %cst_54 : f32 to vector<8x64xf32>
    %174 = arith.mulf %173, %172 : vector<8x64xf32>
    %175 = arith.mulf %174, %174 : vector<8x64xf32>
    %cst_55 = arith.constant 9.99999974E-6 : f32
    %176 = vector.broadcast %cst_55 : f32 to vector<8x64xf32>
    %177 = arith.addf %175, %176 : vector<8x64xf32>
    %178 = math.rsqrt %177 : vector<8x64xf32>
    %179 = arith.mulf %174, %178 : vector<8x64xf32>
    %180 = vector.broadcast %129 : vector<1x64xf32> to vector<8x64xf32>
    %181 = arith.mulf %179, %180 : vector<8x64xf32>
    %182 = vector.broadcast %130 : vector<1x64xf32> to vector<8x64xf32>
    %183 = arith.addf %181, %182 : vector<8x64xf32>
    %cst_56 = arith.constant 5.000000e-01 : f32
    %184 = vector.broadcast %cst_56 : f32 to vector<8x64xf32>
    %185 = arith.mulf %184, %183 : vector<8x64xf32>
    %cst_57 = arith.constant 5.000000e-01 : f32
    %186 = vector.broadcast %cst_57 : f32 to vector<8x64xf32>
    %187 = arith.mulf %186, %183 : vector<8x64xf32>
    %188 = math.tanh %187 : vector<8x64xf32>
    %cst_58 = arith.constant 1.000000e+00 : f32
    %189 = vector.broadcast %cst_58 : f32 to vector<8x64xf32>
    %190 = arith.addf %189, %188 : vector<8x64xf32>
    %191 = arith.mulf %185, %190 : vector<8x64xf32>
    %192 = arith.addf %135, %191 : vector<8x64xf32>
    %c718 = arith.constant 718 : index
    %c0_59 = arith.constant 0 : index
    %193 = vector.load %arg1[%c718, %c0_59] : memref<720x128xf32, #tpu.memory_space<vmem>>, vector<1x64xf32>
    %c719 = arith.constant 719 : index
    %c0_60 = arith.constant 0 : index
    %194 = vector.load %arg1[%c719, %c0_60] : memref<720x128xf32, #tpu.memory_space<vmem>>, vector<1x64xf32>
    %195 = vector.extract_strided_slice %192 {offsets = [0, 1], sizes = [8, 63], strides = [1, 1]} : vector<8x64xf32> to vector<8x63xf32>
    %196 = vector.extract_strided_slice %192 {offsets = [0, 0], sizes = [8, 1], strides = [1, 1]} : vector<8x64xf32> to vector<8x1xf32>
    %197 = tpu.concatenate %195, %196 in 1 : vector<8x63xf32>, vector<8x1xf32> -> vector<8x64xf32>
    %198 = vector.extract_strided_slice %192 {offsets = [0, 63], sizes = [8, 1], strides = [1, 1]} : vector<8x64xf32> to vector<8x1xf32>
    %199 = vector.extract_strided_slice %192 {offsets = [0, 0], sizes = [8, 63], strides = [1, 1]} : vector<8x64xf32> to vector<8x63xf32>
    %200 = tpu.concatenate %198, %199 in 1 : vector<8x1xf32>, vector<8x63xf32> -> vector<8x64xf32>
    %201 = arith.select %19, %197, %200 : vector<8x64xi1>, vector<8x64xf32>
    %202 = arith.subf %192, %201 : vector<8x64xf32>
    %cst_61 = arith.constant 5.000000e-01 : f32
    %203 = vector.broadcast %cst_61 : f32 to vector<8x64xf32>
    %204 = arith.mulf %203, %202 : vector<8x64xf32>
    %205 = arith.mulf %204, %204 : vector<8x64xf32>
    %cst_62 = arith.constant 9.99999974E-6 : f32
    %206 = vector.broadcast %cst_62 : f32 to vector<8x64xf32>
    %207 = arith.addf %205, %206 : vector<8x64xf32>
    %208 = math.rsqrt %207 : vector<8x64xf32>
    %209 = arith.mulf %204, %208 : vector<8x64xf32>
    %210 = vector.broadcast %193 : vector<1x64xf32> to vector<8x64xf32>
    %211 = arith.mulf %209, %210 : vector<8x64xf32>
    %212 = vector.broadcast %194 : vector<1x64xf32> to vector<8x64xf32>
    %213 = arith.addf %211, %212 : vector<8x64xf32>
    %cst_63 = arith.constant 5.000000e-01 : f32
    %214 = vector.broadcast %cst_63 : f32 to vector<8x64xf32>
    %215 = arith.mulf %214, %213 : vector<8x64xf32>
    %cst_64 = arith.constant 5.000000e-01 : f32
    %216 = vector.broadcast %cst_64 : f32 to vector<8x64xf32>
    %217 = arith.mulf %216, %213 : vector<8x64xf32>
    %218 = math.tanh %217 : vector<8x64xf32>
    %cst_65 = arith.constant 1.000000e+00 : f32
    %219 = vector.broadcast %cst_65 : f32 to vector<8x64xf32>
    %220 = arith.addf %219, %218 : vector<8x64xf32>
    %221 = arith.mulf %215, %220 : vector<8x64xf32>
    %c0_66 = arith.constant 0 : index
    %c0_67 = arith.constant 0 : index
    %222 = vector.load %arg2[%c0_66, %c0_67] : memref<8x64xf32, #tpu.memory_space<vmem>>, vector<8x64xf32>
    tpu.vector_store %arg2[%c0_66, %c0_67], %221 {strides = array<i32>} : memref<8x64xf32, #tpu.memory_space<vmem>>, vector<8x64xf32>,
    return
  }
}

</mosaic_0001>

<bundles_post_ra>
// kernel: forward.1
= control target key start
LH: loop header
LB: loop body
LE: loop exit
PB: predicated region body
PF: predicated region fallthrough
CT: control target
= control target key end

     0   :  { %7 = vsyncpa [#allocation3], 0  ;;  %s1394_s0 = inlined_call_operand.vmem [shape: f32[8,128], index: 0, kind: input, shape index: {}]   ;;  %s1395_s1 = inlined_call_operand.hbm [shape: f32[720,128], index: 1, kind: input, shape index: {}]   ;;  %s1396_s2 = inlined_call_operand.hbm [shape: f32[8,64], index: 2, kind: output, shape index: {}]  }
   0x1   :  { %8 = vsyncpa [#allocation4], 0  ;;  %s1196_s9 = smov [#allocation2]  }
   0x2   :  { %s16_s10 = sshll.u32 %s1196_s9, 4  ;;  %s17_s10 = int_to_ptr.vmem [resolvable:$true] %s16_s10 }
   0x3   :  { %s1160_s11 = scalar_lea.vmem %s17_s10, 11520  ;;  %p1165_p1 = scmp.lt.s32.totalorder %s17_s10, %s17_s10 }
   0x4   :  { %p1161_p0 = scmp.ne.s32.totalorder %s17_s10, %s1160_s11  ;;  %p1166_p2 = scmp.lt.s32.totalorder %s1160_s11, %s1160_s11 }
   0x6   :  { %p1167_p3 = por %p1166_p2, %p1165_p1 }
   0x8   :  { %p1168_p4 = pnand %p1167_p3, %p1161_p0 }
   0xa   :  { %1171 = shalt.err (!%p1168_p4)
}
   0xb   :  { %s1197_s12 = smov 128   ;;  %s1198_s13 = smov 8  }
   0xc   :  { %22 = dma.hbm_to_vmem [thread:$0]  %s1395_s1, 11520, %s17_s10, [#allocation3], %s1197_s12, %s1197_s12, %s1198_s13  }
   0xd   :  { %1192 = dma.done.wait [#allocation3], 11520  }
   0xe   :  { %1193 = vsyncadd [#allocation3], 4294955776  ;;  %v1199_v0 = vmov 0.0   ;;  %vm1200_vm0 = vmmov 0   ;;  %v61_v1 = vld [vmem:[#allocation2 + $0x78] sm:$0xff]  ;;  %v60_v2 = vld [vmem:[#allocation2 + $0x70] sm:$0xff] }
   0xf   :  { %923 = vmatprep.subr.mxu0 %v1199_v0  ;;  %955 = vmatprep.mubr.msk.f32.mxu0 %vm1200_vm0, %v1199_v0  ;;  %v59_v3 = vld [vmem:[#allocation2 + $0x68] sm:$0xff]  ;;  %v58_v4 = vld [vmem:[#allocation2 + $0x60] sm:$0xff]  ;;  %v57_v5 = vld [vmem:[#allocation2 + $0x58] sm:$0xff]  ;;  %s1202_s17 = smov 127   ;;  %s1203_s18 = smov 1   ;;  %vm527_vm1 = vcmask 7168  }
  0x10   :  { %958 = vmatprep.subr.mxu1 %v1199_v0  ;;  %990 = vmatprep.mubr.msk.f32.mxu1 %vm1200_vm0, %v1199_v0  ;;  %v56_v6 = vld [vmem:[#allocation2 + $0x50] sm:$0xff]  ;;  %v55_v7 = vld [vmem:[#allocation2 + $0x48] sm:$0xff]  ;;  %v54_v8 = vld [vmem:[#allocation2 + $0x40] sm:$0xff]  ;;  %s1204_s19 = smov 63   ;;  %vm519_vm2 = vcmask 515072   ;;  %vm605_vm4 = vcmask 523264  }
  0x11   :  { %924 = vmatpush3.msra.mxu0 %v61_v1  ;;  %v53_v9 = vld [vmem:[#allocation2 + $0x38] sm:$0xff]  ;;  %v52_v10 = vld [vmem:[#allocation2 + $0x30] sm:$0xff]  ;;  %v51_v13 = vld [vmem:[#allocation2 + $0x28] sm:$0xff]  ;;  %s1205_s20 = smov 64   ;;  %s1206_s21 = smov [#allocation5]  }
  0x12   :  { %925 = vmatprep.subr.mxu0 %v1199_v0  ;;  %v155_v11 = vld [vmem:[#allocation2 + $0xf8] sm:$0xff]  ;;  %v154_v12 = vld [vmem:[#allocation2 + $0xf0] sm:$0xff]  ;;  %v153_v14 = vld [vmem:[#allocation2 + $0xe8] sm:$0xff]  ;;  %s803_s22 = sshll.u32 %s1206_s21, 4  ;;  %s804_s22 = int_to_ptr.vmem [resolvable:$true] %s803_s22 }
  0x13   :  { %926 = vmatpush3.msra.mxu0 %v60_v2  ;;  %959 = vmatpush3.msra.mxu1 %v155_v11  ;;  %v50_v15 = vld [vmem:[#allocation2 + $0x20] sm:$0xff]  ;;  %v49_v17 = vld [vmem:[#allocation2 + $0x18] sm:$0xff]  ;;  %v48_v18 = vld [vmem:[#allocation2 + $0x10] sm:$0xff]  ;;  %s1172_s23 = scalar_lea.vmem %s804_s22, 128  ;;  %p1177_p6 = scmp.lt.s32.totalorder %s804_s22, %s804_s22 }
  0x14   :  { %927 = vmatprep.subr.mxu0 %v1199_v0  ;;  %960 = vmatprep.subr.mxu1 %v1199_v0  ;;  %v152_v16 = vld [vmem:[#allocation2 + $0xe0] sm:$0xff]  ;;  %v47_v19 = vld [vmem:[#allocation2 + $0x8] sm:$0xff]  ;;  %v245_v22 = vld [vmem:[#allocation2 + $0x178] sm:$0xff]  ;;  %p1173_p5 = scmp.ne.s32.totalorder %s804_s22, %s1172_s23  ;;  %p1178_p7 = scmp.lt.s32.totalorder %s1172_s23, %s1172_s23 }
  0x15   :  { %928 = vmatpush3.msra.mxu0 %v59_v3  ;;  %961 = vmatpush3.msra.mxu1 %v154_v12  ;;  %v46_v20 = vld [vmem:[#allocation2] sm:$0xff]  ;;  %v244_v23 = vld [vmem:[#allocation2 + $0x170] sm:$0xff]  ;;  %v243_v24 = vld [vmem:[#allocation2 + $0x168] sm:$0xff] }
  0x16   :  { %929 = vmatprep.subr.mxu0 %v1199_v0  ;;  %962 = vmatprep.subr.mxu1 %v1199_v0  ;;  %v1252_v21 = vld [vmem:[%s1394_s0] sm:$0xff]  ;;  %v241_v26 = vld [vmem:[#allocation2 + $0x158] sm:$0xff]  ;;  %v240_v27 = vld [vmem:[#allocation2 + $0x150] sm:$0xff]  ;;  %s1201_s0 = smov 65   ;;  %p1179_p8 = por %p1178_p7, %p1177_p6 }
  0x17   :  { %930 = vmatpush3.msra.mxu0 %v58_v4  ;;  %963 = vmatpush3.msra.mxu1 %v153_v14  ;;  %v242_v25 = vld [vmem:[#allocation2 + $0x160] sm:$0xff]  ;;  %v239_v28 = vld [vmem:[#allocation2 + $0x148] sm:$0xff]  ;;  %v237_v30 = vld [vmem:[#allocation2 + $0x138] sm:$0xff] }
  0x18   :  { %931 = vmatprep.subr.mxu0 %v1199_v0  ;;  %964 = vmatprep.subr.mxu1 %v1199_v0  ;;  %v238_v29 = vld [vmem:[#allocation2 + $0x140] sm:$0xff]  ;;  %v236_v31 = vld [vmem:[#allocation2 + $0x130] sm:$0xff]  ;;  %v235_v32 = vld [vmem:[#allocation2 + $0x128] sm:$0xff]  ;;  %p1180_p9 = pnand %p1179_p8, %p1173_p5 }
  0x19   :  { %932 = vmatpush3.msra.mxu0 %v57_v5  ;;  %965 = vmatpush3.msra.mxu1 %v152_v16  ;;  %v234_v33 = vld [vmem:[#allocation2 + $0x120] sm:$0xff]  ;;  %v233_v34 = vld [vmem:[#allocation2 + $0x118] sm:$0xff]  ;;  %v232_v35 = vld [vmem:[#allocation2 + $0x110] sm:$0xff] }
  0x1a   :  { %933 = vmatprep.subr.mxu0 %v1199_v0  ;;  %966 = vmatprep.subr.mxu1 %v1199_v0  ;;  %v231_v36 = vld [vmem:[#allocation2 + $0x108] sm:$0xff]  ;;  %v230_v37 = vld [vmem:[#allocation2 + $0x100] sm:$0xff]  ;;  %v431_v38 = vld [vmem:[#allocation2 + $0x278] sm:$0xff] }
  0x1b   :  { %934 = vmatpush3.msra.mxu0 %v56_v6  ;;  %v430_v39 = vld [vmem:[#allocation2 + $0x270] sm:$0xff]  ;;  %v429_v40 = vld [vmem:[#allocation2 + $0x268] sm:$0xff]  ;;  %v428_v41 = vld [vmem:[#allocation2 + $0x260] sm:$0xff] }
  0x1c   :  { %935 = vmatprep.subr.mxu0 %v1199_v0  ;;  %v427_v42 = vld [vmem:[#allocation2 + $0x258] sm:$0xff]  ;;  %v426_v43 = vld [vmem:[#allocation2 + $0x250] sm:$0xff]  ;;  %v425_v44 = vld [vmem:[#allocation2 + $0x248] sm:$0xff] }
  0x1d   :  { %936 = vmatpush3.msra.mxu0 %v55_v7  ;;  %v424_v45 = vld [vmem:[#allocation2 + $0x240] sm:$0xff]  ;;  %v423_v46 = vld [vmem:[#allocation2 + $0x238] sm:$0xff]  ;;  %v422_v47 = vld [vmem:[#allocation2 + $0x230] sm:$0xff] }
  0x1e   :  { %937 = vmatprep.subr.mxu0 %v1199_v0  ;;  %v421_v48 = vld [vmem:[#allocation2 + $0x228] sm:$0xff]  ;;  %v420_v49 = vld [vmem:[#allocation2 + $0x220] sm:$0xff]  ;;  %v419_v50 = vld [vmem:[#allocation2 + $0x218] sm:$0xff] }
  0x1f   :  { %938 = vmatpush3.msra.mxu0 %v54_v8  ;;  %v418_v51 = vld [vmem:[#allocation2 + $0x210] sm:$0xff]  ;;  %v417_v52 = vld [vmem:[#allocation2 + $0x208] sm:$0xff]  ;;  %v416_v53 = vld [vmem:[#allocation2 + $0x200] sm:$0xff] }
  0x20   :  { %939 = vmatprep.subr.mxu0 %v1199_v0  ;;  %v151_v54 = vld [vmem:[#allocation2 + $0xd8] sm:$0xff]  ;;  %v150_v55 = vld [vmem:[#allocation2 + $0xd0] sm:$0xff]  ;;  %v149_v56 = vld [vmem:[#allocation2 + $0xc8] sm:$0xff] }
  0x21   :  { %940 = vmatpush3.msra.mxu0 %v53_v9  ;;  %967 = vmatpush3.msra.mxu1 %v151_v54  ;;  %v148_v57 = vld [vmem:[#allocation2 + $0xc0] sm:$0xff]  ;;  %v147_v58 = vld [vmem:[#allocation2 + $0xb8] sm:$0xff]  ;;  %v146_v59 = vld [vmem:[#allocation2 + $0xb0] sm:$0xff] }
  0x22   :  { %941 = vmatprep.subr.mxu0 %v1199_v0  ;;  %968 = vmatprep.subr.mxu1 %v1199_v0  ;;  %v145_v60 = vld [vmem:[#allocation2 + $0xa8] sm:$0xff]  ;;  %v144_v61 = vld [vmem:[#allocation2 + $0xa0] sm:$0xff]  ;;  %v143_v62 = vld [vmem:[#allocation2 + $0x98] sm:$0xff] }
  0x23   :  { %942 = vmatpush3.msra.mxu0 %v52_v10  ;;  %969 = vmatpush3.msra.mxu1 %v150_v55  ;;  %v142_v63 = vld [vmem:[#allocation2 + $0x90] sm:$0xff]  ;;  %v141_v1 = vld [vmem:[#allocation2 + $0x88] sm:$0xff]  ;;  %v140_v2 = vld [vmem:[#allocation2 + $0x80] sm:$0xff] }
  0x24   :  { %943 = vmatprep.subr.mxu0 %v1199_v0  ;;  %970 = vmatprep.subr.mxu1 %v1199_v0  ;;  %v812_v3 = vld [vmem:[#allocation2 + $0x2c0] ss:$0 sm:$0xff]  ;;  %v341_v11 = vld [vmem:[#allocation2 + $0x1f8] sm:$0xff]  ;;  %v340_v12 = vld [vmem:[#allocation2 + $0x1f0] sm:$0xff] }
  0x25   :  { %944 = vmatpush3.msra.mxu0 %v51_v13  ;;  %971 = vmatpush3.msra.mxu1 %v149_v56 }
  0x26   :  { %945 = vmatprep.subr.mxu0 %v1199_v0  ;;  %972 = vmatprep.subr.mxu1 %v1199_v0 }
  0x27   :  { %946 = vmatpush3.msra.mxu0 %v50_v15  ;;  %973 = vmatpush3.msra.mxu1 %v148_v57  ;;  %v816_v15 = vld [vmem:[#allocation2 + $0x2c4] ss:$0 sm:$0xff] }
  0x28   :  { %947 = vmatprep.subr.mxu0 %v1199_v0  ;;  %974 = vmatprep.subr.mxu1 %v1199_v0 }
  0x29   :  { %948 = vmatpush3.msra.mxu0 %v49_v17  ;;  %975 = vmatpush3.msra.mxu1 %v147_v58 }
  0x2a   :  { %949 = vmatprep.subr.mxu0 %v1199_v0  ;;  %976 = vmatprep.subr.mxu1 %v1199_v0 }
  0x2b   :  { %950 = vmatpush3.msra.mxu0 %v48_v18  ;;  %977 = vmatpush3.msra.mxu1 %v146_v59 }
  0x2c   :  { %951 = vmatprep.subr.mxu0 %v1199_v0  ;;  %978 = vmatprep.subr.mxu1 %v1199_v0 }
  0x2d   :  { %952 = vmatpush3.msra.mxu0 %v47_v19  ;;  %979 = vmatpush3.msra.mxu1 %v145_v60 }
  0x2e   :  { %953 = vmatprep.subr.mxu0 %v1199_v0  ;;  %980 = vmatprep.subr.mxu1 %v1199_v0 }
  0x2f   :  { %954 = vmatpush3.msra.mxu0 %v46_v20  ;;  %981 = vmatpush3.msra.mxu1 %v144_v61  ;;  %v339_v20 = vld [vmem:[#allocation2 + $0x1e8] sm:$0xff] }
  0x30   :  { %956 = vmatmul.mubr.f32.vlgmr.msra.gmra.mxu0 %v1252_v21  ;;  %993 = vmatprep.subr.mxu0 %v1199_v0 }
  0x31   :  { %994 = vmatpush3.msra.mxu0 %v245_v22  ;;  %1025 = vmatprep.mubr.msk.f32.mxu0 %vm1200_vm0, %v1199_v0  ;;  %v337_v22 = vld [vmem:[#allocation2 + $0x1d8] sm:$0xff] }
  0x32   :  { %995 = vmatprep.subr.mxu0 %v1199_v0  ;;  %982 = vmatprep.subr.mxu1 %v1199_v0 }
  0x33   :  { %996 = vmatpush3.msra.mxu0 %v244_v23  ;;  %983 = vmatpush3.msra.mxu1 %v143_v62  ;;  %v336_v23 = vld [vmem:[#allocation2 + $0x1d0] sm:$0xff]  ;;  %v817_v62 = vld [vmem:[#allocation2 + $0x2c5] ss:$0 sm:$0xff] }
  0x34   :  { %997 = vmatprep.subr.mxu0 %v1199_v0  ;;  %984 = vmatprep.subr.mxu1 %v1199_v0 }
  0x35   :  { %998 = vmatpush3.msra.mxu0 %v243_v24  ;;  %985 = vmatpush3.msra.mxu1 %v142_v63  ;;  %v335_v24 = vld [vmem:[#allocation2 + $0x1c8] sm:$0xff] }
  0x36   :  { %999 = vmatprep.subr.mxu0 %v1199_v0  ;;  %986 = vmatprep.subr.mxu1 %v1199_v0 }
  0x37   :  { %1000 = vmatpush3.msra.mxu0 %v242_v25  ;;  %987 = vmatpush3.msra.mxu1 %v141_v1  ;;  %v334_v25 = vld [vmem:[#allocation2 + $0x1c0] sm:$0xff] }
  0x38   :  { %1001 = vmatprep.subr.mxu0 %v1199_v0  ;;  %988 = vmatprep.subr.mxu1 %v1199_v0  ;;  %v818_v1 = vld [vmem:[#allocation2 + $0x2c6] ss:$0 sm:$0xff] }
  0x39   :  { %1002 = vmatpush3.msra.mxu0 %v241_v26  ;;  %989 = vmatpush3.msra.mxu1 %v140_v2  ;;  %v333_v26 = vld [vmem:[#allocation2 + $0x1b8] sm:$0xff] }
  0x3a   :  { %1003 = vmatprep.subr.mxu0 %v1199_v0  ;;  %1028 = vmatprep.subr.mxu1 %v1199_v0 }
  0x3b   :  { %1004 = vmatpush3.msra.mxu0 %v240_v27  ;;  %v332_v27 = vld [vmem:[#allocation2 + $0x1b0] sm:$0xff] }
  0x3c   :  { %1005 = vmatprep.subr.mxu0 %v1199_v0 }
  0x3d   :  { %1006 = vmatpush3.msra.mxu0 %v239_v28  ;;  %v331_v28 = vld [vmem:[#allocation2 + $0x1a8] sm:$0xff] }
  0x3e   :  { %1007 = vmatprep.subr.mxu0 %v1199_v0 }
  0x3f   :  { %1008 = vmatpush3.msra.mxu0 %v238_v29  ;;  %v330_v29 = vld [vmem:[#allocation2 + $0x1a0] sm:$0xff] }
  0x40   :  { %1009 = vmatprep.subr.mxu0 %v1199_v0 }
  0x41   :  { %1010 = vmatpush3.msra.mxu0 %v237_v30  ;;  %v329_v30 = vld [vmem:[#allocation2 + $0x198] sm:$0xff] }
  0x42   :  { %1011 = vmatprep.subr.mxu0 %v1199_v0 }
  0x43   :  { %1012 = vmatpush3.msra.mxu0 %v236_v31  ;;  %v328_v31 = vld [vmem:[#allocation2 + $0x190] sm:$0xff] }
  0x44   :  { %1013 = vmatprep.subr.mxu0 %v1199_v0 }
  0x45   :  { %1014 = vmatpush3.msra.mxu0 %v235_v32  ;;  %v327_v32 = vld [vmem:[#allocation2 + $0x188] sm:$0xff] }
  0x46   :  { %1015 = vmatprep.subr.mxu0 %v1199_v0 }
  0x47   :  { %1016 = vmatpush3.msra.mxu0 %v234_v33  ;;  %v326_v33 = vld [vmem:[#allocation2 + $0x180] sm:$0xff] }
  0x48   :  { %1017 = vmatprep.subr.mxu0 %v1199_v0 }
  0x49   :  { %1018 = vmatpush3.msra.mxu0 %v233_v34  ;;  %v813_v34 = vld [vmem:[#allocation2 + $0x2c1] ss:$0 sm:$0xff] }
  0x4a   :  { %1019 = vmatprep.subr.mxu0 %v1199_v0 }
  0x4b   :  { %1020 = vmatpush3.msra.mxu0 %v232_v35 }
  0x4c   :  { %1021 = vmatprep.subr.mxu0 %v1199_v0 }
  0x4d   :  { %1022 = vmatpush3.msra.mxu0 %v231_v36 }
  0x4e   :  { %1023 = vmatprep.subr.mxu0 %v1199_v0 }
  0x4f   :  { %1024 = vmatpush3.msra.mxu0 %v230_v37  ;;  %v814_v37 = vld [vmem:[#allocation2 + $0x2c2] ss:$0 sm:$0xff] }
  0x50   :  { %1063 = vmatprep.subr.mxu0 %v1199_v0  ;;  %1026 = vmatmul.mubr.f32.vlgmr.msra.gmra.mxu0 %v1252_v21 }
  0x51   :  { %1064 = vmatpush3.msra.mxu0 %v431_v38  ;;  %1095 = vmatprep.mubr.msk.f32.mxu0 %vm1200_vm0, %v1199_v0 }
  0x52   :  { %1065 = vmatprep.subr.mxu0 %v1199_v0 }
  0x53   :  { %1066 = vmatpush3.msra.mxu0 %v430_v39 }
  0x54   :  { %1067 = vmatprep.subr.mxu0 %v1199_v0 }
  0x55   :  { %1068 = vmatpush3.msra.mxu0 %v429_v40 }
  0x56   :  { %1069 = vmatprep.subr.mxu0 %v1199_v0 }
  0x57   :  { %1070 = vmatpush3.msra.mxu0 %v428_v41 }
  0x58   :  { %1071 = vmatprep.subr.mxu0 %v1199_v0 }
  0x59   :  { %1072 = vmatpush3.msra.mxu0 %v427_v42 }
  0x5a   :  { %1073 = vmatprep.subr.mxu0 %v1199_v0 }
  0x5b   :  { %1074 = vmatpush3.msra.mxu0 %v426_v43 }
  0x5c   :  { %1075 = vmatprep.subr.mxu0 %v1199_v0 }
  0x5d   :  { %1076 = vmatpush3.msra.mxu0 %v425_v44 }
  0x5e   :  { %1077 = vmatprep.subr.mxu0 %v1199_v0 }
  0x5f   :  { %1078 = vmatpush3.msra.mxu0 %v424_v45  ;;  %v27_v45 = vlaneseq }
  0x60   :  { %1079 = vmatprep.subr.mxu0 %v1199_v0 }
  0x61   :  { %1080 = vmatpush3.msra.mxu0 %v423_v46 }
  0x62   :  { %1081 = vmatprep.subr.mxu0 %v1199_v0 }
  0x63   :  { %1082 = vmatpush3.msra.mxu0 %v422_v47 }
  0x64   :  { %1083 = vmatprep.subr.mxu0 %v1199_v0 }
  0x65   :  { %1084 = vmatpush3.msra.mxu0 %v421_v48  ;;  %v28_v48 = vand.u32 127, %v27_v45 }
  0x66   :  { %1085 = vmatprep.subr.mxu0 %v1199_v0 }
  0x67   :  { %1086 = vmatpush3.msra.mxu0 %v420_v49  ;;  %v33_v49 = vand.u32 1, %v28_v48 }
  0x68   :  { %1087 = vmatprep.subr.mxu0 %v1199_v0 }
  0x69   :  { %1088 = vmatpush3.msra.mxu0 %v419_v50  ;;  %vm1337_vm3 = vcmp.eq.s32.totalorder %v33_v49, 0 }
  0x6a   :  { %1089 = vmatprep.subr.mxu0 %v1199_v0 }
  0x6b   :  { %1090 = vmatpush3.msra.mxu0 %v418_v51 }
  0x6c   :  { %1091 = vmatprep.subr.mxu0 %v1199_v0 }
  0x6d   :  { %1092 = vmatpush3.msra.mxu0 %v417_v52 }
  0x6e   :  { %1093 = vmatprep.subr.mxu0 %v1199_v0 }
  0x6f   :  { %1094 = vmatpush3.msra.mxu0 %v416_v53 }
  0x70   :  { %1096 = vmatmul.mubr.f32.vlgmr.msra.gmra.mxu0 %v1252_v21  ;;  %v338_v21 = vld [vmem:[#allocation2 + $0x1e0] sm:$0xff] }
  0xf0   :  { %v132_v4 = vpop.f32.mrf.mxu0 }
  0xf1   :  { %v133_v5 = vadd.f32 %v812_v3, %v132_v4 }
  0xf2   :  { %v957_v6 = vpop.f32.mrf.mxu0 }
  0xf3   :  { %v136_v7 = vmul.f32 0.5, %v133_v5  ;;  %v815_v6 = vld [vmem:[#allocation2 + $0x2c3] ss:$0 sm:$0xff] }
  0xf5   :  { %1128 = vtanh.f32 %v136_v7 }
 0x102   :  { %v1129_v8 = vpop.eup %1128 }
 0x103   :  { %v138_v9 = vadd.f32 1.0, %v1129_v8 }
 0x105   :  { %v139_v10 = vmul.f32 %v138_v9, %v136_v7 }
 0x107   :  { %991 = vmatmul.mubr.f32.vlgmr.msra.gmra.mxu1 %v139_v10 }
 0x108   :  { %1029 = vmatpush3.msra.mxu1 %v341_v11  ;;  %1060 = vmatprep.mubr.msk.f32.mxu1 %vm1200_vm0, %v1199_v0 }
 0x109   :  { %1030 = vmatprep.subr.mxu1 %v1199_v0 }
 0x10a   :  { %1031 = vmatpush3.msra.mxu1 %v340_v12  ;;  %v595_v12 = vld [vmem:[#allocation2 + $0x2b8] sm:$0xff] }
 0x10b   :  { %1032 = vmatprep.subr.mxu1 %v1199_v0 }
 0x10c   :  { %1033 = vmatpush3.msra.mxu1 %v339_v20  ;;  %v588_v20 = vld [vmem:[#allocation2 + $0x280] sm:$0xff] }
 0x10d   :  { %1034 = vmatprep.subr.mxu1 %v1199_v0 }
 0x10e   :  { %1035 = vmatpush3.msra.mxu1 %v338_v21 }
 0x10f   :  { %1036 = vmatprep.subr.mxu1 %v1199_v0 }
 0x110   :  { %v312_v13 = vpop.f32.mrf.mxu0  ;;  %1037 = vmatpush3.msra.mxu1 %v337_v22 }
 0x111   :  { %1038 = vmatprep.subr.mxu1 %v1199_v0 }
 0x112   :  { %v1027_v14 = vpop.f32.mrf.mxu0  ;;  %1039 = vmatpush3.msra.mxu1 %v336_v23 }
 0x113   :  { %1040 = vmatprep.subr.mxu1 %v1199_v0  ;;  %v593_v14 = vld [vmem:[#allocation2 + $0x2a8] sm:$0xff] }
 0x114   :  { %1041 = vmatpush3.msra.mxu1 %v335_v24 }
 0x115   :  { %1042 = vmatprep.subr.mxu1 %v1199_v0 }
 0x116   :  { %1043 = vmatpush3.msra.mxu1 %v334_v25 }
 0x117   :  { %1044 = vmatprep.subr.mxu1 %v1199_v0 }
 0x118   :  { %1045 = vmatpush3.msra.mxu1 %v333_v26 }
 0x119   :  { %1046 = vmatprep.subr.mxu1 %v1199_v0 }
 0x11a   :  { %1047 = vmatpush3.msra.mxu1 %v332_v27 }
 0x11b   :  { %1048 = vmatprep.subr.mxu1 %v1199_v0 }
 0x11c   :  { %1049 = vmatpush3.msra.mxu1 %v331_v28 }
 0x11d   :  { %1050 = vmatprep.subr.mxu1 %v1199_v0 }
 0x11e   :  { %1051 = vmatpush3.msra.mxu1 %v330_v29 }
 0x11f   :  { %1052 = vmatprep.subr.mxu1 %v1199_v0 }
 0x120   :  { %1053 = vmatpush3.msra.mxu1 %v329_v30 }
 0x121   :  { %1054 = vmatprep.subr.mxu1 %v1199_v0 }
 0x122   :  { %1055 = vmatpush3.msra.mxu1 %v328_v31 }
 0x123   :  { %1056 = vmatprep.subr.mxu1 %v1199_v0 }
 0x124   :  { %1057 = vmatpush3.msra.mxu1 %v327_v32 }
 0x125   :  { %1058 = vmatprep.subr.mxu1 %v1199_v0 }
 0x126   :  { %1059 = vmatpush3.msra.mxu1 %v326_v33  ;;  %v819_v33 = vld [vmem:[#allocation2 + $0x2c7] ss:$0 sm:$0xff] }
 0x127   :  { %1098 = vmatprep.subr.mxu1 %v1199_v0 }
 0x130   :  { %v507_v16 = vpop.f32.mrf.mxu0 }
 0x131   :  { %v508_v17 = vadd.f32 %v816_v15, %v507_v16  ;;  %v592_v15 = vld [vmem:[#allocation2 + $0x2a0] sm:$0xff]  ;;  %v591_v16 = vld [vmem:[#allocation2 + $0x298] sm:$0xff] }
 0x132   :  { %v1097_v18 = vpop.f32.mrf.mxu0 }
 0x133   :  { %v1310_v19 = vmax.f32 %v508_v17, 0.0  ;;  %v590_v17 = vld [vmem:[#allocation2 + $0x290] sm:$0xff]  ;;  %v589_v18 = vld [vmem:[#allocation2 + $0x288] sm:$0xff] }
 0x135   :  { %521 = vrot.lane.b32.xlu1 %v1310_v19, %s1201_s0  ;;  %513 = vrot.lane.b32.xlu0 %v1310_v19, %s1202_s17 }
 0x139   :  { %524 = vrot.lane.b32.xlu1 %v1310_v19, %s1203_s18  ;;  %516 = vrot.lane.b32.xlu0 %v1310_v19, %s1204_s19 }
 0x1a7   :  { %v522_v46 = vpop.permute.xlu1 %521  ;;  %v514_v47 = vpop.permute.xlu0 %513 }
 0x1ab   :  { %v525_v50 = vpop.permute.xlu1 %524  ;;  %v517_v51 = vpop.permute.xlu0 %516 }
 0x1ac   :  { %v528_v52 = vsel %vm527_vm1, %v522_v46, %v525_v50  ;;  %v520_v54 = vsel %vm519_vm2, %v514_v47, %v517_v51 }
 0x1ad   :  { %v529_v55 = vsel %vm1337_vm3, %v520_v54, %v528_v52 }
 0x1ae   :  { %v530_v56 = vsub.f32 %v1310_v19, %v529_v55 }
 0x1b0   :  { %v531_v57 = vmul.f32 0.5, %v530_v56 }
 0x1b2   :  { %v532_v58 = vmul.f32 %v531_v57, %v531_v57 }
 0x1b4   :  { %v533_v59 = vadd.f32 1e-05, %v532_v58 }
 0x1c7   :  { %v226_v35 = vpop.f32.mrf.mxu1 }
 0x1c8   :  { %v227_v36 = vadd.f32 %v813_v34, %v226_v35  ;;  %v820_v34 = vld [vmem:[#allocation2 + $0x2c8] ss:$0 sm:$0xff] }
 0x1c9   :  { %v992_v38 = vpop.f32.mrf.mxu1 }
 0x1ca   :  { %v316_v39 = vadd.f32 %v312_v13, %v227_v36  ;;  %v594_v13 = vld [vmem:[#allocation2 + $0x2b0] sm:$0xff] }
 0x1cc   :  { %v321_v40 = vadd.f32 %v814_v37, %v316_v39 }
 0x1ce   :  { %v322_v41 = vmul.f32 0.5, %v321_v40 }
 0x1d0   :  { %1130 = vtanh.f32 %v322_v41 }
 0x1d1   :  { %1132 = vrsqrt.f32 %v533_v59  ;;  %v823_v59 = vld [vmem:[#allocation2 + $0x2ca] ss:$0 sm:$0xff] }
 0x1dd   :  { %v1131_v42 = vpop.eup %1130 }
 0x1de   :  { %v324_v43 = vadd.f32 1.0, %v1131_v42  ;;  %v1133_v60 = vpop.eup %1132  ;;  %v821_v42 = vld [vmem:[#allocation2 + $0x2c9] ss:$0 sm:$0xff] }
 0x1df   :  { %v535_v61 = vmul.f32 %v1133_v60, %v531_v57 }
 0x1e0   :  { %v325_v44 = vmul.f32 %v324_v43, %v322_v41 }
 0x1e1   :  { %v540_v63 = vmul.f32 %v817_v62, %v535_v61  ;;  %v824_v61 = vld [vmem:[#allocation2 + $0x2cb] ss:$0 sm:$0xff] }
 0x1e2   :  { %1061 = vmatmul.mubr.f32.vlgmr.msra.gmra.mxu1 %v325_v44 }
 0x1e3   :  { %1114 = vmatprep.mubr.msk.f32.mxu1 %vm1200_vm0, %v1199_v0  ;;  %v545_v2 = vadd.f32 %v818_v1, %v540_v63  ;;  %1099 = vmatpush3.msra.mxu1 %v595_v12 }
 0x1e4   :  { %1100 = vmatprep.subr.mxu1 %v1199_v0 }
 0x1e5   :  { %v546_v3 = vmul.f32 0.5, %v545_v2  ;;  %1101 = vmatpush3.msra.mxu1 %v594_v13 }
 0x1e6   :  { %1102 = vmatprep.subr.mxu1 %v1199_v0 }
 0x1e7   :  { %1134 = vtanh.f32 %v546_v3  ;;  %1103 = vmatpush3.msra.mxu1 %v593_v14 }
 0x1e8   :  { %1104 = vmatprep.subr.mxu1 %v1199_v0 }
 0x1e9   :  { %1105 = vmatpush3.msra.mxu1 %v592_v15 }
 0x1ea   :  { %1106 = vmatprep.subr.mxu1 %v1199_v0 }
 0x1eb   :  { %1107 = vmatpush3.msra.mxu1 %v591_v16 }
 0x1ec   :  { %1108 = vmatprep.subr.mxu1 %v1199_v0 }
 0x1ed   :  { %1109 = vmatpush3.msra.mxu1 %v590_v17 }
 0x1ee   :  { %1110 = vmatprep.subr.mxu1 %v1199_v0 }
 0x1ef   :  { %1111 = vmatpush3.msra.mxu1 %v589_v18 }
 0x1f0   :  { %1112 = vmatprep.subr.mxu1 %v1199_v0 }
 0x1f1   :  { %1113 = vmatpush3.msra.mxu1 %v588_v20  ;;  %v825_v20 = vld [vmem:[#allocation2 + $0x2cc] ss:$0 sm:$0xff] }
 0x1f4   :  { %v1135_v4 = vpop.eup %1134 }
 0x1f5   :  { %v548_v5 = vadd.f32 1.0, %v1135_v4 }
 0x1f7   :  { %v549_v9 = vmul.f32 %v548_v5, %v546_v3 }
 0x2a2   :  { %v412_v7 = vpop.f32.mrf.mxu1 }
 0x2a3   :  { %v1345_v8 = vadd.f32 %v815_v6, %v412_v7 }
 0x2a4   :  { %v1062_v10 = vpop.f32.mrf.mxu1 }
 0x2a5   :  { %v550_v11 = vadd.f32 %v549_v9, %v1345_v8 }
 0x2a7   :  { %555 = vrot.lane.b32.xlu1 %v550_v11, %s1204_s19  ;;  %552 = vrot.lane.b32.xlu0 %v550_v11, %s1202_s17 }
 0x2ab   :  { %562 = vrot.lane.b32.xlu1 %v550_v11, %s1203_s18  ;;  %559 = vrot.lane.b32.xlu0 %v550_v11, %s1201_s0 }
 0x319   :  { %v556_v21 = vpop.permute.xlu1 %555  ;;  %v553_v22 = vpop.permute.xlu0 %552 }
 0x31a   :  { %v558_v25 = vsel %vm519_vm2, %v553_v22, %v556_v21  ;;  %v826_v22 = vld [vmem:[#allocation2 + $0x2cd] ss:$0 sm:$0xff] }
 0x31d   :  { %v563_v23 = vpop.permute.xlu1 %562  ;;  %v560_v24 = vpop.permute.xlu0 %559 }
 0x31e   :  { %v565_v26 = vsel %vm527_vm1, %v560_v24, %v563_v23 }
 0x31f   :  { %v566_v27 = vsel %vm1337_vm3, %v558_v25, %v565_v26 }
 0x320   :  { %v567_v28 = vsub.f32 %v550_v11, %v566_v27 }
 0x322   :  { %v568_v29 = vmul.f32 0.5, %v567_v28 }
 0x324   :  { %v569_v30 = vmul.f32 %v568_v29, %v568_v29 }
 0x326   :  { %v570_v31 = vadd.f32 1e-05, %v569_v30 }
 0x328   :  { %1136 = vrsqrt.f32 %v570_v31 }
 0x335   :  { %v1137_v32 = vpop.eup %1136 }
 0x336   :  { %v572_v0 = vmul.f32 %v1137_v32, %v568_v29 }
 0x338   :  { %v577_v35 = vmul.f32 %v819_v33, %v572_v0 }
 0x33a   :  { %v582_v36 = vadd.f32 %v820_v34, %v577_v35 }
 0x33c   :  { %v583_v37 = vmul.f32 0.5, %v582_v36 }
 0x33e   :  { %1138 = vtanh.f32 %v583_v37 }
 0x34b   :  { %v1139_v38 = vpop.eup %1138 }
 0x34c   :  { %v585_v39 = vadd.f32 1.0, %v1139_v38 }
 0x34e   :  { %v586_v40 = vmul.f32 %v585_v39, %v583_v37 }
 0x350   :  { %v587_v41 = vadd.f32 %v586_v40, %v1310_v19 }
 0x352   :  { %1115 = vmatmul.mubr.msk.f32.vlgmr.msra.gmra.mxu1 %vm605_vm4, %v587_v41  ;;  %v827_v41 = vld [vmem:[#allocation2 + $0x2ce] ss:$0 sm:$0xff] }
 0x412   :  { %v675_v43 = vpop.f32.mrf.mxu1 }
 0x413   :  { %v676_v44 = vadd.f32 %v821_v42, %v675_v43  ;;  %v828_v43 = vld [vmem:[#allocation2 + $0x2cf] ss:$0 sm:$0xff] }
 0x414   :  { %v1116_v45 = vpop.f32.mrf.mxu1 }
 0x415   :  { %v679_v46 = vmax.f32 %v676_v44, 0.0 }
 0x417   :  { %684 = vrot.lane.b32.xlu1 %v679_v46, %s1204_s19  ;;  %681 = vrot.lane.b32.xlu0 %v679_v46, %s1202_s17 }
 0x41b   :  { %691 = vrot.lane.b32.xlu1 %v679_v46, %s1203_s18  ;;  %688 = vrot.lane.b32.xlu0 %v679_v46, %s1201_s0 }
 0x41f   :  { %717 = vrot.lane.b32.xlu0 %v1345_v8, %s1205_s20 }
 0x489   :  { %v685_v47 = vpop.permute.xlu1 %684  ;;  %v682_v19 = vpop.permute.xlu0 %681 }
 0x48a   :  { %v687_v50 = vsel %vm519_vm2, %v682_v19, %v685_v47 }
 0x48d   :  { %v692_v48 = vpop.permute.xlu1 %691  ;;  %v689_v49 = vpop.permute.xlu0 %688 }
 0x48e   :  { %v694_v51 = vsel %vm527_vm1, %v689_v49, %v692_v48 }
 0x48f   :  { %v695_v52 = vsel %vm1337_vm3, %v687_v50, %v694_v51 }
 0x490   :  { %v696_v54 = vsub.f32 %v679_v46, %v695_v52 }
 0x491   :  { %v718_v5 = vpop.permute.xlu0 %717 }
 0x492   :  { %v697_v55 = vmul.f32 0.5, %v696_v54 }
 0x494   :  { %v698_v56 = vmul.f32 %v697_v55, %v697_v55 }
 0x496   :  { %v699_v57 = vadd.f32 1e-05, %v698_v56 }
 0x498   :  { %1140 = vrsqrt.f32 %v699_v57 }
 0x4a5   :  { %v1141_v58 = vpop.eup %1140 }
 0x4a6   :  { %v701_v60 = vmul.f32 %v1141_v58, %v697_v55 }
 0x4a8   :  { %v706_v62 = vmul.f32 %v823_v59, %v701_v60 }
 0x4aa   :  { %v711_v63 = vadd.f32 %v824_v61, %v706_v62 }
 0x4ac   :  { %v712_v1 = vmul.f32 0.5, %v711_v63 }
 0x4ae   :  { %1142 = vtanh.f32 %v712_v1 }
 0x4bb   :  { %v1143_v2 = vpop.eup %1142 }
 0x4bc   :  { %v714_v3 = vadd.f32 1.0, %v1143_v2 }
 0x4be   :  { %v715_v4 = vmul.f32 %v714_v3, %v712_v1 }
 0x4c0   :  { %v720_v6 = vadd.f32 %v718_v5, %v715_v4 }
 0x4c2   :  { %725 = vrot.lane.b32.xlu0 %v720_v6, %s1204_s19  ;;  %722 = vrot.lane.b32.xlu1 %v720_v6, %s1202_s17 }
 0x4c6   :  { %732 = vrot.lane.b32.xlu0 %v720_v6, %s1203_s18  ;;  %729 = vrot.lane.b32.xlu1 %v720_v6, %s1201_s0 }
 0x534   :  { %v726_v7 = vpop.permute.xlu0 %725  ;;  %v723_v8 = vpop.permute.xlu1 %722 }
 0x535   :  { %v728_v11 = vsel %vm519_vm2, %v723_v8, %v726_v7 }
 0x538   :  { %v733_v9 = vpop.permute.xlu0 %732  ;;  %v730_v10 = vpop.permute.xlu1 %729 }
 0x539   :  { %v735_v12 = vsel %vm527_vm1, %v730_v10, %v733_v9 }
 0x53a   :  { %v736_v13 = vsel %vm1337_vm3, %v728_v11, %v735_v12 }
 0x53b   :  { %v737_v14 = vsub.f32 %v720_v6, %v736_v13 }
 0x53d   :  { %v738_v15 = vmul.f32 0.5, %v737_v14 }
 0x53f   :  { %v739_v16 = vmul.f32 %v738_v15, %v738_v15 }
 0x541   :  { %v740_v17 = vadd.f32 1e-05, %v739_v16 }
 0x543   :  { %1144 = vrsqrt.f32 %v740_v17 }
 0x550   :  { %v1145_v18 = vpop.eup %1144 }
 0x551   :  { %v742_v21 = vmul.f32 %v1145_v18, %v738_v15 }
 0x553   :  { %v747_v23 = vmul.f32 %v825_v20, %v742_v21 }
 0x555   :  { %v752_v24 = vadd.f32 %v826_v22, %v747_v23 }
 0x557   :  { %v753_v25 = vmul.f32 0.5, %v752_v24 }
 0x559   :  { %1146 = vtanh.f32 %v753_v25 }
 0x566   :  { %v1147_v26 = vpop.eup %1146 }
 0x567   :  { %v755_v27 = vadd.f32 1.0, %v1147_v26 }
 0x569   :  { %v756_v28 = vmul.f32 %v755_v27, %v753_v25 }
 0x56b   :  { %v757_v29 = vadd.f32 %v756_v28, %v679_v46 }
 0x56d   :  { %764 = vrot.lane.b32.xlu0 %v757_v29, %s1204_s19  ;;  %761 = vrot.lane.b32.xlu1 %v757_v29, %s1202_s17 }
 0x571   :  { %771 = vrot.lane.b32.xlu0 %v757_v29, %s1203_s18  ;;  %768 = vrot.lane.b32.xlu1 %v757_v29, %s1201_s0 }
 0x5df   :  { %v765_v30 = vpop.permute.xlu0 %764  ;;  %v762_v31 = vpop.permute.xlu1 %761 }
 0x5e0   :  { %v767_v0 = vsel %vm519_vm2, %v762_v31, %v765_v30 }
 0x5e3   :  { %v772_v32 = vpop.permute.xlu0 %771  ;;  %v769_v33 = vpop.permute.xlu1 %768 }
 0x5e4   :  { %v774_v34 = vsel %vm527_vm1, %v769_v33, %v772_v32 }
 0x5e5   :  { %v775_v35 = vsel %vm1337_vm3, %v767_v0, %v774_v34 }
 0x5e6   :  { %v776_v36 = vsub.f32 %v757_v29, %v775_v35 }
 0x5e8   :  { %v777_v37 = vmul.f32 0.5, %v776_v36 }
 0x5ea   :  { %v778_v38 = vmul.f32 %v777_v37, %v777_v37 }
 0x5ec   :  { %v779_v39 = vadd.f32 1e-05, %v778_v38 }
 0x5ee   :  { %1148 = vrsqrt.f32 %v779_v39 }
 0x5fb   :  { %v1149_v40 = vpop.eup %1148 }
 0x5fc   :  { %v781_v42 = vmul.f32 %v1149_v40, %v777_v37 }
 0x5fe   :  { %v786_v44 = vmul.f32 %v827_v41, %v781_v42 }
 0x600   :  { %v791_v45 = vadd.f32 %v828_v43, %v786_v44 }
 0x602   :  { %v792_v46 = vmul.f32 0.5, %v791_v45 }
 0x604   :  { %1150 = vtanh.f32 %v792_v46 }
 0x611   :  { %v1151_v47 = vpop.eup %1150 }
 0x612   :  { %v794_v19 = vadd.f32 1.0, %v1151_v47 }
 0x614   :  { %v795_v48 = vmul.f32 %v794_v19, %v792_v46 }
 0x616   :  { %796 = vst.msk [vmem:[#allocation5] sm:$0xff] %vm605_vm4, %v795_v48 }
 0x617   :  { %1183 = shalt.err (!%p1180_p9)
}
 0x618   :  { %806 = dma.vmem_to_hbm [thread:$0]  %s804_s22, 128, %s1396_s2, [#allocation4]  }
 0x619   :  { %1194 = dma.done.wait [#allocation4], 128  }
 0x61a   :  { %1195 = vsyncadd [#allocation4], 4294967168 }
 0x61b   :  { %810 = vsyncpa [#allocation3], 1 }
 0x61c   :  { %811 = vsyncpa [#allocation4], 1 }

</bundles_post_ra>
